<compile_context>
chip_gen: v6e
topology: v6e:2x2x1
jax: 0.10.0
libtpu: 0.0.40
codegen_flags: <defaults>
</compile_context>

<pallas_src>
import jax
import jax.numpy as jnp
from jax import lax
from jax.experimental import pallas as pl
from jax.experimental.pallas import tpu as pltpu

PAD = 0


def _softplus_b(x, b):
    # numerically stable (1/b) * log(1 + exp(b*x))
    z = b * x
    return (jnp.maximum(z, 0.0) + jnp.log1p(jnp.exp(-jnp.abs(z)))) / b


def lrh_kernel(scal_ref, tcol_ref, trow_ref, npt_ref, npf_ref, oh_ref, emb_ref,
               base_ref, wlin_ref, blin_ref, wheads_ref,
               enc_out_ref, enc_att_ref, lam_ref, heads_ref,
               *scratch):
    TQ = tcol_ref.shape[1]          # row tile of the sequence dimension
    S = emb_ref.shape[1]            # full sequence length (contraction dim)
    r = pl.program_id(1)

    alpha = scal_ref[0]
    beta1 = scal_ref[1]
    beta2 = scal_ref[2]

    t_i = tcol_ref[0]               # (TQ, 1) normalized times, this row tile
    t_j = trow_ref[0]               # (1, S)  normalized times, all columns
    np_i = npt_ref[0]               # (TQ, 1) non-pad mask, this row tile
    np_all = npf_ref[0]             # (S, 1)  non-pad mask, all rows
    oh = oh_ref[0]                  # (S, TP) bf16 permuted one-hot of event types
    emb_m = emb_ref[0]              # (S, DP) bf16 masked, zero-padded embeddings

    # ---- factored time kernel: exp(a*(ti-tj)) = exp(a*ti) * exp(-a*tj) ------
    e_row = jnp.exp(alpha * t_i)                                    # (TQ, 1)
    e_col = jnp.exp(-alpha * t_j)                                   # (1, S)
    ridx = lax.broadcasted_iota(jnp.int32, (TQ, S), 0) + r * TQ     # global row
    cidx = lax.broadcasted_iota(jnp.int32, (TQ, S), 1)
    decay = jnp.where(cidx <= ridx, e_row * e_col, 0.0)             # (TQ, S) f32
    decay_bf = decay.astype(jnp.bfloat16)

    # ---- infectivity over ALL rows (needed in the contraction dim) ----------
    # lanes 0..T-1 == infect[:, 1:], lane T == infect[:, 0] (wrapper permutation)
    pre = jnp.dot(emb_m, wlin_ref[...], preferred_element_type=jnp.float32)
    infect = np_all * _softplus_b(pre + blin_ref[...], beta2)       # (S, TP) f32
    infect_bf = infect.astype(jnp.bfloat16)

    # all_lambda (lane-padded): mu + time_decay @ infect[:, 1:]
    mu = np_i * _softplus_b(base_ref[...], beta1)                   # (TQ, TP)
    lam_ref[0] = mu + jnp.dot(decay_bf, infect_bf,
                              preferred_element_type=jnp.float32)

    # enc_att[i, j] = infect[i, type[j]] * time_decay[i, j]
    # gather realized as a matmul with the (permuted) one-hot -> MXU friendly.
    if scratch:
        # general row-tiled path: stage full infect, slice this tile's rows.
        infect_sc, = scratch
        infect_sc[...] = infect
        i0 = pl.multiple_of(r * TQ, TQ)
        infect_tile = infect_sc[pl.ds(i0, TQ), :].astype(jnp.bfloat16)
    else:
        # single-tile path (TQ == S): tile rows are all rows.
        infect_tile = infect_bf
    gathered = lax.dot_general(infect_tile, oh, (((1,), (1,)), ((), ())),
                               preferred_element_type=jnp.float32)  # (TQ, S)
    enc_att_ref[0] = gathered * decay

    # enc_output = time_decay @ masked embeddings
    enc_out = jnp.dot(decay_bf, emb_m, preferred_element_type=jnp.float32)
    enc_out_ref[0] = enc_out                                        # (TQ, DP)

    # fused prediction heads: lanes [0..T-1] = type head, lane [T] = time head
    heads_ref[0] = np_i * jnp.dot(enc_out.astype(jnp.bfloat16), wheads_ref[...],
                                  preferred_element_type=jnp.float32)


def _round_up(x, m):
    return ((x + m - 1) // m) * m


def low_rank_hawkes_forward(event_type, event_time, params, *, row_tile=None):
    """Pallas implementation of LowRankHawkes.forward."""
    B, S = event_type.shape
    Tp1, D = params["emb"].shape
    T = Tp1 - 1

    DP = _round_up(max(D, 128), 128)       # lane-dense model dim
    TP = _round_up(max(Tp1, 128), 128)     # lane-dense type/head dim

    # Row (query) tile of the sequence dimension; contraction dim stays full S.
    if row_tile is not None:
        TQ = row_tile
    elif S <= 512:
        TQ = S
    else:
        TQ = S
        for cand in (512, 256, 128, 64, 32, 16, 8):
            if S % cand == 0:
                TQ = cand
                break
    assert S % TQ == 0, "sequence length must be divisible by the row tile"
    NT = S // TQ

    # ---------------- wrapper-side glue (lookup / masks / padding) -----------
    non_pad = (event_type != PAD).astype(jnp.float32)[..., None]        # (B,S,1)
    et = event_time.astype(jnp.float32)
    tn = et / (jnp.sqrt(jnp.sum(et * et, axis=1, keepdims=True)) + 1e-8)
    tn_col = tn[..., None]                                              # (B,S,1)
    tn_row = tn[:, None, :]                                             # (B,1,S)

    # permuted lane order for the type dim: [1, 2, ..., T, 0, pad...]
    lane_of_type = jnp.where(event_type == PAD, T, event_type - 1)
    onehot = (lane_of_type[..., None] ==
              jnp.arange(TP, dtype=jnp.int32)[None, None, :]).astype(jnp.bfloat16)

    emb = params["emb"].astype(jnp.float32)[event_type] * non_pad       # (B,S,D)
    emb = jnp.pad(emb, ((0, 0), (0, 0), (0, DP - D))).astype(jnp.bfloat16)

    perm = jnp.concatenate([jnp.arange(1, Tp1, dtype=jnp.int32),
                            jnp.zeros((1,), jnp.int32)])
    wlin = params["lin_w"].astype(jnp.float32).T[:, perm]               # (D,Tp1)
    wlin = jnp.pad(wlin, ((0, DP - D), (0, TP - Tp1))).astype(jnp.bfloat16)
    blin = jnp.pad(params["lin_b"].astype(jnp.float32)[perm],
                   (0, TP - Tp1)).reshape(1, TP)
    base = jnp.pad(params["base_intensity"].astype(jnp.float32).reshape(T),
                   (0, TP - T)).reshape(1, TP)

    # fused predictor heads: lanes [0..T-1] = type head, lane [T] = time head
    wheads = jnp.concatenate([params["type_w"].astype(jnp.float32).T,
                              params["time_w"].astype(jnp.float32).T], axis=1)
    wheads = jnp.pad(wheads, ((0, DP - D), (0, TP - Tp1))).astype(jnp.bfloat16)

    scal = jnp.array([params["alpha"], params["beta1"], params["beta2"]],
                     dtype=jnp.float32)

    shared2 = lambda shp: pl.BlockSpec(shp, lambda b, r: (0, 0))

    in_specs = [
        pl.BlockSpec(memory_space=pltpu.MemorySpace.SMEM),      # alpha/beta scalars
        pl.BlockSpec((1, TQ, 1), lambda b, r: (b, r, 0)),       # times (row tile)
        pl.BlockSpec((1, 1, S), lambda b, r: (b, 0, 0)),        # times (full row)
        pl.BlockSpec((1, TQ, 1), lambda b, r: (b, r, 0)),       # mask (row tile)
        pl.BlockSpec((1, S, 1), lambda b, r: (b, 0, 0)),        # mask (full)
        pl.BlockSpec((1, S, TP), lambda b, r: (b, 0, 0)),       # one-hot (full)
        pl.BlockSpec((1, S, DP), lambda b, r: (b, 0, 0)),       # embeddings (full)
        shared2((1, TP)),                                       # base intensity
        shared2((DP, TP)),                                      # linear weight
        shared2((1, TP)),                                       # linear bias
        shared2((DP, TP)),                                      # fused head weights
    ]
    out_specs = [
        pl.BlockSpec((1, TQ, DP), lambda b, r: (b, r, 0)),      # enc_output (pad)
        pl.BlockSpec((1, TQ, S), lambda b, r: (b, r, 0)),       # enc_att
        pl.BlockSpec((1, TQ, TP), lambda b, r: (b, r, 0)),      # all_lambda (pad)
        pl.BlockSpec((1, TQ, TP), lambda b, r: (b, r, 0)),      # fused heads (pad)
    ]
    out_shapes = (
        jax.ShapeDtypeStruct((B, S, DP), jnp.float32),
        jax.ShapeDtypeStruct((B, S, S), jnp.float32),
        jax.ShapeDtypeStruct((B, S, TP), jnp.float32),
        jax.ShapeDtypeStruct((B, S, TP), jnp.float32),
    )
    scratch_shapes = [] if TQ == S else [pltpu.VMEM((S, TP), jnp.float32)]

    grid_spec = pltpu.PrefetchScalarGridSpec(
        num_scalar_prefetch=0,
        grid=(B, NT),
        in_specs=in_specs,
        out_specs=out_specs,
        scratch_shapes=scratch_shapes,
    )

    enc_out_p, enc_att, lam_p, heads_p = pl.pallas_call(
        lrh_kernel,
        out_shape=out_shapes,
        grid_spec=grid_spec,
        compiler_params=pltpu.CompilerParams(
            dimension_semantics=("parallel", "parallel"),
            vmem_limit_bytes=48 * 1024 * 1024),
    )(scal, tn_col, tn_row, non_pad, non_pad, onehot, emb,
      base, wlin, blin, wheads)

    enc_output = enc_out_p[:, :, :D]
    all_lambda = lam_p[:, :, :T]
    type_pred = heads_p[:, :, :T]
    time_pred = heads_p[:, :, T:Tp1]
    return enc_output, enc_att, all_lambda, non_pad, (type_pred, time_pred)


def reference_forward(event_type, event_time, params):
    """Pure-JAX mirror of the PyTorch forward (for verification)."""
    B, S = event_type.shape
    Tp1, D = params["emb"].shape
    T = Tp1 - 1
    non_pad = (event_type != PAD).astype(jnp.float32)[..., None]
    subseq = jnp.triu(jnp.ones((S, S), jnp.float32), k=1)[None]
    t = event_time / (jnp.sqrt(jnp.sum(event_time ** 2, axis=1, keepdims=True)) + 1e-8)
    dt = t[:, :, None] - t[:, None, :]
    time_decay = jnp.exp(params["alpha"] * dt) * (1.0 - subseq)
    emb = params["emb"][event_type] * non_pad
    sp = lambda x, b: (1.0 / b) * jnp.log(1.0 + jnp.exp(b * x))
    mu = non_pad * sp(params["base_intensity"], params["beta1"])
    infect = non_pad * sp(emb @ params["lin_w"].T + params["lin_b"], params["beta2"])
    all_lambda = mu + jnp.einsum("bij,bjk->bik", time_decay, infect[:, :, 1:])
    idx = jnp.broadcast_to(event_type[:, None, :], (B, S, S))
    enc_att = jnp.take_along_axis(infect, idx, axis=2) * time_decay
    enc_output = jnp.einsum("bij,bjd->bid", time_decay, emb)
    time_pred = (enc_output @ params["time_w"].T) * non_pad
    type_pred = (enc_output @ params["type_w"].T) * non_pad
    return enc_output, enc_att, all_lambda, non_pad, (type_pred, time_pred)


if __name__ == "__main__":
    # small shapes: batch=2, seq=8, d_model=32, num_types=4
    B, S, D, T = 2, 8, 32, 4
    Tp1 = T + 1

    key = jax.random.PRNGKey(0)
    k = jax.random.split(key, 10)

    emb_table = jax.random.normal(k[0], (Tp1, D), jnp.float32) * 0.1
    emb_table = emb_table.at[PAD].set(0.0)          # padding_idx=PAD
    params = dict(
        alpha=jnp.float32(-0.1),
        beta1=jnp.float32(1.0),
        beta2=jnp.float32(1.0),
        emb=emb_table,
        lin_w=jax.random.normal(k[1], (Tp1, D), jnp.float32) / jnp.sqrt(D),
        lin_b=jax.random.normal(k[2], (Tp1,), jnp.float32) * 0.01,
        base_intensity=jax.random.normal(k[3], (1, 1, T), jnp.float32),
        time_w=jax.random.normal(k[4], (1, D), jnp.float32) / jnp.sqrt(D),
        type_w=jax.random.normal(k[5], (T, D), jnp.float32) / jnp.sqrt(D),
    )

    event_type = jax.random.randint(k[6], (B, S), 1, Tp1).astype(jnp.int32)
    event_type = event_type.at[0, 6:].set(PAD)      # some padding
    event_type = event_type.at[1, 7:].set(PAD)
    event_time = jnp.cumsum(jax.random.uniform(k[7], (B, S), jnp.float32), axis=1)
    event_time = event_time * (event_type != PAD)

    outs = low_rank_hawkes_forward(event_type, event_time, params)
    outs = jax.block_until_ready(outs)
    enc_output, enc_att, all_lambda, non_pad_mask, (type_pred, time_pred) = outs

    # verify against pure-JAX reference (bf16 MXU inputs -> tolerance 5e-2)
    ref = reference_forward(event_type, event_time, params)
    ref_enc, ref_att, ref_lam, ref_mask, (ref_type, ref_time) = ref
    for got, want in [(enc_output, ref_enc), (enc_att, ref_att),
                      (all_lambda, ref_lam), (non_pad_mask, ref_mask),
                      (type_pred, ref_type), (time_pred, ref_time)]:
        assert got.shape == want.shape, (got.shape, want.shape)
        err = float(jnp.max(jnp.abs(got - want)))
        assert err < 5e-2, f"max abs err too large: {err}"

    print("KERNEL_OK")
</pallas_src>

<mosaic_0001>
module attributes {stable_mosaic.version = 11 : i64} {
  func.func @lrh_kernel(%arg0: i32, %arg1: i32, %arg2: memref<3xf32, #tpu.memory_space<smem>>, %arg3: memref<1x8x1xf32, #tpu.memory_space<vmem>>, %arg4: memref<1x1x8xf32, #tpu.memory_space<vmem>>, %arg5: memref<1x8x1xf32, #tpu.memory_space<vmem>>, %arg6: memref<1x8x1xf32, #tpu.memory_space<vmem>>, %arg7: memref<1x8x128xbf16, #tpu.memory_space<vmem>>, %arg8: memref<1x8x128xbf16, #tpu.memory_space<vmem>>, %arg9: memref<1x128xf32, #tpu.memory_space<vmem>>, %arg10: memref<128x128xbf16, #tpu.memory_space<vmem>>, %arg11: memref<1x128xf32, #tpu.memory_space<vmem>>, %arg12: memref<128x128xbf16, #tpu.memory_space<vmem>>, %arg13: memref<1x8x128xf32, #tpu.memory_space<vmem>>, %arg14: memref<1x8x8xf32, #tpu.memory_space<vmem>>, %arg15: memref<1x8x128xf32, #tpu.memory_space<vmem>>, %arg16: memref<1x8x128xf32, #tpu.memory_space<vmem>>) attributes {dimension_semantics = [#tpu.dimension_semantics<parallel>, #tpu.dimension_semantics<parallel>], iteration_bounds = array<i64: 2, 1>, scalar_prefetch = 0 : i64, scratch_operands = 0 : i64, tpu.core_type = #tpu.core_type<tc>, window_params = [{transform_indices = @transform_0, window_bounds = array<i64: 3>}, {transform_indices = @transform_1, window_bounds = array<i64: 1, 8, 1>}, {transform_indices = @transform_2, window_bounds = array<i64: 1, 1, 8>}, {transform_indices = @transform_3, window_bounds = array<i64: 1, 8, 1>}, {transform_indices = @transform_4, window_bounds = array<i64: 1, 8, 1>}, {transform_indices = @transform_5, window_bounds = array<i64: 1, 8, 128>}, {transform_indices = @transform_6, window_bounds = array<i64: 1, 8, 128>}, {pipeline_mode = #tpu.pipeline_mode<synchronous>, transform_indices = @transform_7, window_bounds = array<i64: 1, 128>}, {pipeline_mode = #tpu.pipeline_mode<synchronous>, transform_indices = @transform_8, window_bounds = array<i64: 128, 128>}, {pipeline_mode = #tpu.pipeline_mode<synchronous>, transform_indices = @transform_9, window_bounds = array<i64: 1, 128>}, {pipeline_mode = #tpu.pipeline_mode<synchronous>, transform_indices = @transform_10, window_bounds = array<i64: 128, 128>}, {transform_indices = @transform_11, window_bounds = array<i64: 1, 8, 128>}, {transform_indices = @transform_12, window_bounds = array<i64: 1, 8, 8>}, {transform_indices = @transform_13, window_bounds = array<i64: 1, 8, 128>}, {transform_indices = @transform_14, window_bounds = array<i64: 1, 8, 128>}]} {
    %c0 = arith.constant 0 : index
    %0 = memref.load %arg2[%c0] : memref<3xf32, #tpu.memory_space<smem>>
    %c1 = arith.constant 1 : index
    %1 = memref.load %arg2[%c1] : memref<3xf32, #tpu.memory_space<smem>>
    %c2 = arith.constant 2 : index
    %2 = memref.load %arg2[%c2] : memref<3xf32, #tpu.memory_space<smem>>
    %c0_0 = arith.constant 0 : index
    %c0_1 = arith.constant 0 : index
    %c0_2 = arith.constant 0 : index
    %3 = vector.load %arg3[%c0_0, %c0_1, %c0_2] : memref<1x8x1xf32, #tpu.memory_space<vmem>>, vector<1x8x1xf32>
    %4 = vector.shape_cast %3 : vector<1x8x1xf32> to vector<8x1xf32>
    %c0_3 = arith.constant 0 : index
    %c0_4 = arith.constant 0 : index
    %c0_5 = arith.constant 0 : index
    %5 = vector.load %arg4[%c0_3, %c0_4, %c0_5] : memref<1x1x8xf32, #tpu.memory_space<vmem>>, vector<1x1x8xf32>
    %6 = vector.shape_cast %5 : vector<1x1x8xf32> to vector<1x8xf32>
    %c0_6 = arith.constant 0 : index
    %c0_7 = arith.constant 0 : index
    %c0_8 = arith.constant 0 : index
    %7 = vector.load %arg5[%c0_6, %c0_7, %c0_8] : memref<1x8x1xf32, #tpu.memory_space<vmem>>, vector<1x8x1xf32>
    %8 = vector.shape_cast %7 : vector<1x8x1xf32> to vector<8x1xf32>
    %c0_9 = arith.constant 0 : index
    %c0_10 = arith.constant 0 : index
    %c0_11 = arith.constant 0 : index
    %9 = vector.load %arg6[%c0_9, %c0_10, %c0_11] : memref<1x8x1xf32, #tpu.memory_space<vmem>>, vector<1x8x1xf32>
    %10 = vector.shape_cast %9 : vector<1x8x1xf32> to vector<8x1xf32>
    %c0_12 = arith.constant 0 : index
    %c0_13 = arith.constant 0 : index
    %c0_14 = arith.constant 0 : index
    %11 = vector.load %arg7[%c0_12, %c0_13, %c0_14] : memref<1x8x128xbf16, #tpu.memory_space<vmem>>, vector<1x8x128xbf16>
    %12 = vector.shape_cast %11 : vector<1x8x128xbf16> to vector<8x128xbf16>
    %c0_15 = arith.constant 0 : index
    %c0_16 = arith.constant 0 : index
    %c0_17 = arith.constant 0 : index
    %13 = vector.load %arg8[%c0_15, %c0_16, %c0_17] : memref<1x8x128xbf16, #tpu.memory_space<vmem>>, vector<1x8x128xbf16>
    %14 = vector.shape_cast %13 : vector<1x8x128xbf16> to vector<8x128xbf16>
    %15 = vector.broadcast %0 : f32 to vector<8x1xf32>
    %16 = arith.mulf %15, %4 : vector<8x1xf32>
    %17 = math.exp %16 : vector<8x1xf32>
    %cst = arith.constant 0.000000e+00 : f32
    %18 = arith.subf %cst, %0 : f32
    %19 = vector.broadcast %18 : f32 to vector<1x8xf32>
    %20 = arith.mulf %19, %6 : vector<1x8xf32>
    %21 = math.exp %20 : vector<1x8xf32>
    %22 = tpu.iota {dimensions = array<i32: 0>} : vector<8x8xi32>
    %c8_i32 = arith.constant 8 : i32
    %23 = arith.muli %arg1, %c8_i32 : i32
    %24 = vector.broadcast %23 : i32 to vector<8x8xi32>
    %25 = arith.addi %22, %24 : vector<8x8xi32>
    %26 = tpu.iota {dimensions = array<i32: 1>} : vector<8x8xi32>
    %27 = arith.cmpi sle, %26, %25 : vector<8x8xi32>
    %28 = vector.broadcast %17 : vector<8x1xf32> to vector<8x8xf32>
    %29 = vector.broadcast %21 : vector<1x8xf32> to vector<8x8xf32>
    %30 = arith.mulf %28, %29 : vector<8x8xf32>
    %cst_18 = arith.constant 0.000000e+00 : f32
    %31 = vector.broadcast %cst_18 : f32 to vector<8x8xf32>
    %32 = arith.select %27, %30, %31 : vector<8x8xi1>, vector<8x8xf32>
    %33 = arith.truncf %32 : vector<8x8xf32> to vector<8x8xbf16>
    %c0_19 = arith.constant 0 : index
    %c0_20 = arith.constant 0 : index
    %34 = vector.load %arg10[%c0_19, %c0_20] : memref<128x128xbf16, #tpu.memory_space<vmem>>, vector<128x128xbf16>
    %cst_21 = arith.constant dense<0.000000e+00> : vector<8x128xf32>
    %35 = tpu.matmul %14, %34, %cst_21 {dimension_numbers = #tpu.dot_dimension_numbers<[1], [0], [0], [1], [0, 0, 1, 1], [], []>} : vector<8x128xbf16>, vector<128x128xbf16>, vector<8x128xf32> -> vector<8x128xf32>
    %c0_22 = arith.constant 0 : index
    %c0_23 = arith.constant 0 : index
    %36 = vector.load %arg11[%c0_22, %c0_23] : memref<1x128xf32, #tpu.memory_space<vmem>>, vector<1x128xf32>
    %37 = vector.broadcast %36 : vector<1x128xf32> to vector<8x128xf32>
    %38 = arith.addf %35, %37 : vector<8x128xf32>
    %39 = vector.broadcast %2 : f32 to vector<8x128xf32>
    %40 = arith.mulf %39, %38 : vector<8x128xf32>
    %cst_24 = arith.constant 0.000000e+00 : f32
    %41 = vector.broadcast %cst_24 : f32 to vector<8x128xf32>
    %42 = arith.maximumf %40, %41 : vector<8x128xf32>
    %43 = math.absf %40 : vector<8x128xf32>
    %cst_25 = arith.constant 0.000000e+00 : f32
    %44 = vector.broadcast %cst_25 : f32 to vector<8x128xf32>
    %45 = arith.subf %44, %43 : vector<8x128xf32>
    %46 = math.exp %45 : vector<8x128xf32>
    %47 = math.log1p %46 : vector<8x128xf32>
    %48 = arith.addf %42, %47 : vector<8x128xf32>
    %49 = vector.broadcast %2 : f32 to vector<8x128xf32>
    %50 = arith.divf %48, %49 : vector<8x128xf32>
    %51 = vector.broadcast %10 : vector<8x1xf32> to vector<8x128xf32>
    %52 = arith.mulf %51, %50 : vector<8x128xf32>
    %53 = arith.truncf %52 : vector<8x128xf32> to vector<8x128xbf16>
    %c0_26 = arith.constant 0 : index
    %c0_27 = arith.constant 0 : index
    %54 = vector.load %arg9[%c0_26, %c0_27] : memref<1x128xf32, #tpu.memory_space<vmem>>, vector<1x128xf32>
    %55 = vector.broadcast %1 : f32 to vector<1x128xf32>
    %56 = arith.mulf %55, %54 : vector<1x128xf32>
    %cst_28 = arith.constant 0.000000e+00 : f32
    %57 = vector.broadcast %cst_28 : f32 to vector<1x128xf32>
    %58 = arith.maximumf %56, %57 : vector<1x128xf32>
    %59 = math.absf %56 : vector<1x128xf32>
    %cst_29 = arith.constant 0.000000e+00 : f32
    %60 = vector.broadcast %cst_29 : f32 to vector<1x128xf32>
    %61 = arith.subf %60, %59 : vector<1x128xf32>
    %62 = math.exp %61 : vector<1x128xf32>
    %63 = math.log1p %62 : vector<1x128xf32>
    %64 = arith.addf %58, %63 : vector<1x128xf32>
    %65 = vector.broadcast %1 : f32 to vector<1x128xf32>
    %66 = arith.divf %64, %65 : vector<1x128xf32>
    %67 = vector.broadcast %8 : vector<8x1xf32> to vector<8x128xf32>
    %68 = vector.broadcast %66 : vector<1x128xf32> to vector<8x128xf32>
    %69 = arith.mulf %67, %68 : vector<8x128xf32>
    %cst_30 = arith.constant dense<0.000000e+00> : vector<8x128xf32>
    %70 = tpu.matmul %33, %53, %cst_30 {dimension_numbers = #tpu.dot_dimension_numbers<[1], [0], [0], [1], [0, 0, 1, 1], [], []>} : vector<8x8xbf16>, vector<8x128xbf16>, vector<8x128xf32> -> vector<8x128xf32>
    %71 = arith.addf %69, %70 : vector<8x128xf32>
    %c0_31 = arith.constant 0 : index
    %c0_32 = arith.constant 0 : index
    %c0_33 = arith.constant 0 : index
    %72 = vector.load %arg15[%c0_31, %c0_32, %c0_33] : memref<1x8x128xf32, #tpu.memory_space<vmem>>, vector<1x8x128xf32>
    %73 = vector.shape_cast %72 : vector<1x8x128xf32> to vector<8x128xf32>
    %74 = vector.shape_cast %71 : vector<8x128xf32> to vector<1x8x128xf32>
    tpu.vector_store %arg15[%c0_31, %c0_32, %c0_33], %74 {strides = array<i32>} : memref<1x8x128xf32, #tpu.memory_space<vmem>>, vector<1x8x128xf32>,
    %cst_34 = arith.constant dense<0.000000e+00> : vector<8x8xf32>
    %75 = tpu.matmul %53, %12, %cst_34 {dimension_numbers = #tpu.dot_dimension_numbers<[1], [1], [0], [0], [0, 0, 1, 0], [], []>} : vector<8x128xbf16>, vector<8x128xbf16>, vector<8x8xf32> -> vector<8x8xf32>
    %76 = arith.mulf %75, %32 : vector<8x8xf32>
    %c0_35 = arith.constant 0 : index
    %c0_36 = arith.constant 0 : index
    %c0_37 = arith.constant 0 : index
    %77 = vector.load %arg14[%c0_35, %c0_36, %c0_37] : memref<1x8x8xf32, #tpu.memory_space<vmem>>, vector<1x8x8xf32>
    %78 = vector.shape_cast %77 : vector<1x8x8xf32> to vector<8x8xf32>
    %79 = vector.shape_cast %76 : vector<8x8xf32> to vector<1x8x8xf32>
    tpu.vector_store %arg14[%c0_35, %c0_36, %c0_37], %79 {strides = array<i32>} : memref<1x8x8xf32, #tpu.memory_space<vmem>>, vector<1x8x8xf32>,
    %cst_38 = arith.constant dense<0.000000e+00> : vector<8x128xf32>
    %80 = tpu.matmul %33, %14, %cst_38 {dimension_numbers = #tpu.dot_dimension_numbers<[1], [0], [0], [1], [0, 0, 1, 1], [], []>} : vector<8x8xbf16>, vector<8x128xbf16>, vector<8x128xf32> -> vector<8x128xf32>
    %c0_39 = arith.constant 0 : index
    %c0_40 = arith.constant 0 : index
    %c0_41 = arith.constant 0 : index
    %81 = vector.load %arg13[%c0_39, %c0_40, %c0_41] : memref<1x8x128xf32, #tpu.memory_space<vmem>>, vector<1x8x128xf32>
    %82 = vector.shape_cast %81 : vector<1x8x128xf32> to vector<8x128xf32>
    %83 = vector.shape_cast %80 : vector<8x128xf32> to vector<1x8x128xf32>
    tpu.vector_store %arg13[%c0_39, %c0_40, %c0_41], %83 {strides = array<i32>} : memref<1x8x128xf32, #tpu.memory_space<vmem>>, vector<1x8x128xf32>,
    %84 = arith.truncf %80 : vector<8x128xf32> to vector<8x128xbf16>
    %c0_42 = arith.constant 0 : index
    %c0_43 = arith.constant 0 : index
    %85 = vector.load %arg12[%c0_42, %c0_43] : memref<128x128xbf16, #tpu.memory_space<vmem>>, vector<128x128xbf16>
    %cst_44 = arith.constant dense<0.000000e+00> : vector<8x128xf32>
    %86 = tpu.matmul %84, %85, %cst_44 {dimension_numbers = #tpu.dot_dimension_numbers<[1], [0], [0], [1], [0, 0, 1, 1], [], []>} : vector<8x128xbf16>, vector<128x128xbf16>, vector<8x128xf32> -> vector<8x128xf32>
    %87 = vector.broadcast %8 : vector<8x1xf32> to vector<8x128xf32>
    %88 = arith.mulf %87, %86 : vector<8x128xf32>
    %c0_45 = arith.constant 0 : index
    %c0_46 = arith.constant 0 : index
    %c0_47 = arith.constant 0 : index
    %89 = vector.load %arg16[%c0_45, %c0_46, %c0_47] : memref<1x8x128xf32, #tpu.memory_space<vmem>>, vector<1x8x128xf32>
    %90 = vector.shape_cast %89 : vector<1x8x128xf32> to vector<8x128xf32>
    %91 = vector.shape_cast %88 : vector<8x128xf32> to vector<1x8x128xf32>
    tpu.vector_store %arg16[%c0_45, %c0_46, %c0_47], %91 {strides = array<i32>} : memref<1x8x128xf32, #tpu.memory_space<vmem>>, vector<1x8x128xf32>,
    return
  }
  func.func @transform_0(%arg0: i32, %arg1: i32) -> i32 {
    %c0_i32 = arith.constant 0 : i32
    %c0_i32_0 = arith.constant 0 : i32
    return %c0_i32 : i32
  }
  func.func @transform_1(%arg0: i32, %arg1: i32) -> (i32, i32, i32) {
    %c0_i32 = arith.constant 0 : i32
    %c0_i32_0 = arith.constant 0 : i32
    return %arg0, %arg1, %c0_i32 : i32, i32, i32
  }
  func.func @transform_2(%arg0: i32, %arg1: i32) -> (i32, i32, i32) {
    %c0_i32 = arith.constant 0 : i32
    %c0_i32_0 = arith.constant 0 : i32
    %c0_i32_1 = arith.constant 0 : i32
    return %arg0, %c0_i32, %c0_i32_0 : i32, i32, i32
  }
  func.func @transform_3(%arg0: i32, %arg1: i32) -> (i32, i32, i32) {
    %c0_i32 = arith.constant 0 : i32
    %c0_i32_0 = arith.constant 0 : i32
    return %arg0, %arg1, %c0_i32 : i32, i32, i32
  }
  func.func @transform_4(%arg0: i32, %arg1: i32) -> (i32, i32, i32) {
    %c0_i32 = arith.constant 0 : i32
    %c0_i32_0 = arith.constant 0 : i32
    %c0_i32_1 = arith.constant 0 : i32
    return %arg0, %c0_i32, %c0_i32_0 : i32, i32, i32
  }
  func.func @transform_5(%arg0: i32, %arg1: i32) -> (i32, i32, i32) {
    %c0_i32 = arith.constant 0 : i32
    %c0_i32_0 = arith.constant 0 : i32
    %c0_i32_1 = arith.constant 0 : i32
    return %arg0, %c0_i32, %c0_i32_0 : i32, i32, i32
  }
  func.func @transform_6(%arg0: i32, %arg1: i32) -> (i32, i32, i32) {
    %c0_i32 = arith.constant 0 : i32
    %c0_i32_0 = arith.constant 0 : i32
    %c0_i32_1 = arith.constant 0 : i32
    return %arg0, %c0_i32, %c0_i32_0 : i32, i32, i32
  }
  func.func @transform_7(%arg0: i32, %arg1: i32) -> (i32, i32) {
    %c0_i32 = arith.constant 0 : i32
    %c0_i32_0 = arith.constant 0 : i32
    %c0_i32_1 = arith.constant 0 : i32
    return %c0_i32, %c0_i32_0 : i32, i32
  }
  func.func @transform_8(%arg0: i32, %arg1: i32) -> (i32, i32) {
    %c0_i32 = arith.constant 0 : i32
    %c0_i32_0 = arith.constant 0 : i32
    %c0_i32_1 = arith.constant 0 : i32
    return %c0_i32, %c0_i32_0 : i32, i32
  }
  func.func @transform_9(%arg0: i32, %arg1: i32) -> (i32, i32) {
    %c0_i32 = arith.constant 0 : i32
    %c0_i32_0 = arith.constant 0 : i32
    %c0_i32_1 = arith.constant 0 : i32
    return %c0_i32, %c0_i32_0 : i32, i32
  }
  func.func @transform_10(%arg0: i32, %arg1: i32) -> (i32, i32) {
    %c0_i32 = arith.constant 0 : i32
    %c0_i32_0 = arith.constant 0 : i32
    %c0_i32_1 = arith.constant 0 : i32
    return %c0_i32, %c0_i32_0 : i32, i32
  }
  func.func @transform_11(%arg0: i32, %arg1: i32) -> (i32, i32, i32) {
    %c0_i32 = arith.constant 0 : i32
    %c0_i32_0 = arith.constant 0 : i32
    return %arg0, %arg1, %c0_i32 : i32, i32, i32
  }
  func.func @transform_12(%arg0: i32, %arg1: i32) -> (i32, i32, i32) {
    %c0_i32 = arith.constant 0 : i32
    %c0_i32_0 = arith.constant 0 : i32
    return %arg0, %arg1, %c0_i32 : i32, i32, i32
  }
  func.func @transform_13(%arg0: i32, %arg1: i32) -> (i32, i32, i32) {
    %c0_i32 = arith.constant 0 : i32
    %c0_i32_0 = arith.constant 0 : i32
    return %arg0, %arg1, %c0_i32 : i32, i32, i32
  }
  func.func @transform_14(%arg0: i32, %arg1: i32) -> (i32, i32, i32) {
    %c0_i32 = arith.constant 0 : i32
    %c0_i32_0 = arith.constant 0 : i32
    return %arg0, %arg1, %c0_i32 : i32, i32, i32
  }
}

</mosaic_0001>

<bundles_post_ra>
// kernel: tpu_custom_call.1
= control target key start
LH: loop header
LB: loop body
LE: loop exit
PB: predicated region body
PF: predicated region fallthrough
CT: control target
= control target key end

     0   :  { %s2523_s0 = inlined_call_operand.vmem [shape: f32[3], index: 0, kind: input, shape index: {}]   ;;  %s2524_s1 = inlined_call_operand.vmem [shape: f32[2,8,1], index: 1, kind: input, shape index: {}]   ;;  %s2525_s2 = inlined_call_operand.vmem [shape: f32[2,1,8], index: 2, kind: input, shape index: {}]   ;;  %s2526_s3 = inlined_call_operand.vmem [shape: f32[2,8,1], index: 3, kind: input, shape index: {}]   ;;  %s2527_s4 = inlined_call_operand.vmem [shape: f32[2,8,1], index: 4, kind: input, shape index: {}]   ;;  %s2528_s5 = inlined_call_operand.hbm [shape: bf16[2,8,128], index: 5, kind: input, shape index: {}]   ;;  %s2529_s6 = inlined_call_operand.hbm [shape: bf16[2,8,128], index: 6, kind: input, shape index: {}]   ;;  %s2530_s7 = inlined_call_operand.vmem [shape: f32[1,128], index: 7, kind: input, shape index: {}]   ;;  %s2531_s8 = inlined_call_operand.vmem [shape: bf16[128,128], index: 8, kind: input, shape index: {}]   ;;  %s2532_s9 = inlined_call_operand.vmem [shape: f32[1,128], index: 9, kind: input, shape index: {}]   ;;  %s2533_s10 = inlined_call_operand.hbm [shape: bf16[128,128], index: 10, kind: input, shape index: {}]   ;;  %s2534_s11 = inlined_call_operand.hbm [shape: f32[2,8,128], index: 11, kind: output, shape index: {0}]   ;;  %s2535_s12 = inlined_call_operand.hbm [shape: f32[2,8,8], index: 12, kind: output, shape index: {1}]   ;;  %s2536_s13 = inlined_call_operand.hbm [shape: f32[2,8,128], index: 13, kind: output, shape index: {2}]   ;;  %s2537_s14 = inlined_call_operand.hbm [shape: f32[2,8,128], index: 14, kind: output, shape index: {3}]  }
   0x1   :  { %2549 = sst [smem:[#allocation27_spill]] %s2523_s0 }
   0x2   :  { %2550 = sst [smem:[#allocation28_spill]] %s2524_s1 }
   0x3   :  { %2551 = sst [smem:[#allocation29_spill]] %s2525_s2 }
   0x4   :  { %2552 = sst [smem:[#allocation30_spill]] %s2528_s5 }
   0x5   :  { %2553 = sst [smem:[#allocation31_spill]] %s2529_s6 }
   0x6   :  { %2554 = sst [smem:[#allocation32_spill]] %s2533_s10 }
   0x7   :  { %2555 = sst [smem:[#allocation33_spill]] %s2534_s11 }
   0x8   :  { %2556 = sst [smem:[#allocation34_spill]] %s2535_s12 }
   0x9   :  { %2557 = sst [smem:[#allocation35_spill]] %s2536_s13 }
   0xa   :  { %2558 = sst [smem:[#allocation36_spill]] %s2537_s14 }
   0xb   :  { %20 = vsyncpa [#allocation5], 0 }
   0xc   :  { %21 = vsyncpa [#allocation3], 0 }
   0xd   :  { %23 = vsyncpa [#allocation3 + $0x1], 0 }
   0xe   :  { %24 = vsyncpa [#allocation8], 0 }
   0xf   :  { %26 = vsyncpa [#allocation8 + $0x1], 0 }
  0x10   :  { %27 = vsyncpa [#allocation4], 0 }
  0x11   :  { %29 = vsyncpa [#allocation4 + $0x1], 0 }
  0x12   :  { %30 = vsyncpa [#allocation12], 0 }
  0x13   :  { %32 = vsyncpa [#allocation12 + $0x1], 0 }
  0x14   :  { %33 = vsyncpa [#allocation15], 0 }
  0x15   :  { %35 = vsyncpa [#allocation15 + $0x1], 0  ;;  %s2120_s29 = smov 0   ;;  %s2122_s30 = smov 0  }
  0x16   :  { %s2124_s15 = smov 0   ;;  %s2126_s16 = smov 0  }
  0x17   :  { %s2128_s17 = smov 0   ;;  %s2130_s18 = smov 0  }
  0x18 LB: > { %2559 = sst [smem:[#allocation23_spill]] %s2010_s29  ;;  %s2151_s19 = sadd.s32 4294967295, %s2030_s18   ;;  %s2030_s18 = sphi %s2130_s18, %s41_s18   ;;  %s2026_s17 = sphi %s2128_s17, %s2591_s17   ;;  %s2022_s16 = sphi %s2126_s16, %s2590_s16   ;;  %s2018_s15 = sphi %s2124_s15, %s2594_s15   ;;  %s2014_s30 = sphi %s2122_s30, %s2593_s30   ;;  %s2010_s29 = sphi %s2120_s29, %s2592_s29  }
  0x19   : > { %2560 = sst [smem:[#allocation24_spill]] %s2026_s17  ;;  %s2538_s20 = sadd.s32 4294967294, %s2030_s18  }
  0x1a   : > { %p202_p0 = scmp.ne.s32.totalorder %s2014_s30, %s2010_s29  ;;  %p2541_p1 = scmp.eq.s32.totalorder %s2151_s19, 0 }
  0x1b   : > { %p344_p3 = scmp.eq.s32.totalorder %s2538_s20, 1  ;;  %p1480_p5 = scmp.ge.s32.totalorder %s2030_s18, 1 }
  0x1c   : > { %p2162_p4 = por %p2541_p1, %p202_p0  ;;  %p435_p7 = scmp.lt.s32.totalorder %s2030_s18, 3 }
  0x1d   : > { %p2167_p6 = por %p344_p3, %p202_p0  ;;  %s2032_s24 = smov [#allocation9]  }
  0x1e   : > { %p2172_p8 = pnand %p1480_p5, %p435_p7  ;;  %s467_s25 = sshll.u32 %s2032_s24, 4  ;;  %s468_s25 = int_to_ptr.vmem [resolvable:$true] %s467_s25 }
  0x1f   : > { %s2562_s22 = scalar_select %p2167_p6, 1, 0 }
  0x20   : > { %p1633_p9 = pneg %p2172_p8  ;;  %s2566_s0 = sld [smem:[#allocation27_spill]] }
  0x21   : > { %2563 = sst [smem:[#allocation25_spill]] %s2562_s22  ;;  %s1766_s22 = scalar_lea.vmem %s468_s25, 1024 }
  0x22   : > { %p2181_p11 = pnand %p1633_p9, %p2541_p1  ;;  %p1767_p13 = scmp.ne.s32.totalorder %s468_s25, %s1766_s22 }
  0x23   : > { %p1774_p5 = scmp.lt.s32.totalorder %s468_s25, %s468_s25  ;;  %p1775_p7 = scmp.lt.s32.totalorder %s1766_s22, %s1766_s22 }
  0x24   : > { %p1757_p12 = pneg %p2181_p11 }
  0x25   : > { %p1776_p9 = por %p1775_p7, %p1774_p5 }
  0x26   : > { %s448_s20 = sshll.u32 %s2566_s0, 4  ;;  %p1769_p0 = pnand %p1767_p13, %p1757_p12  ;;  %s449_s20 = int_to_ptr.vmem [resolvable:$true] %s448_s20 }
  0x28   : > { %p1770_p3 = pneg %p1769_p0 }
  0x2a   : > { %p1777_p10 = pnand %p1776_p9, %p1770_p3 }
  0x2c   : > { %1780 = shalt.err (!%p1777_p10)
}
  0x2d   : > { %s2033_s24 = smov 64   ;;  %s2034_s27 = smov 4  }
  0x2e   : > { %s2567_s10 = sld [smem:[#allocation32_spill]]  ;;  %s1781_s29 = scalar_lea.vmem %s449_s20, 16 }
  0x2f   : > { %p1782_p1 = scmp.ne.s32.totalorder %s449_s20, %s1781_s29  ;;  %p1789_p2 = scmp.lt.s32.totalorder %s449_s20, %s449_s20 }
  0x30   : > { %p1790_p6 = scmp.lt.s32.totalorder %s1781_s29, %s1781_s29 }
  0x31   : > { %p1784_p13 = pnand %p1782_p1, %p1757_p12 }
  0x32   : > { %p1791_p5 = por %p1790_p6, %p1789_p2 }
  0x33   : > { %p1785_p0 = pneg %p1784_p13 }
  0x34   : > { %1639 = dma.hbm_to_vmem [thread:$0]  (!%p2181_p11), %s2567_s10, 1024, %s468_s25, [#allocation8], %s2033_s24, %s2033_s24, %s2034_s27  }
  0x35   : > { %p1792_p3 = pnand %p1791_p5, %p1785_p0 }
  0x37   : > { %1795 = shalt.err (!%p1792_p3)
}
  0x38   : > { %s2035_s22 = smov [#allocation2]   ;;  %s53_s0 = sadd.s32 1, %s2026_s17 }
  0x39   : > { %1636 = dma.vmem_to_smem (!%p2181_p11), %s449_s20, 16, %s2035_s22, [#allocation5]  }
  0x3a   : > { %s189_s29 = sadd.s32 1, %s2018_s15  ;;  %p55_p1 = scmp.ge.s32.totalorder %s53_s0, 2 }
  0x3b   : > { %p196_p2 = scmp.ne.s32.totalorder %s2018_s15, %s2014_s30  ;;  %p197_p6 = scmp.eq.s32.totalorder %s2030_s18, 0 }
  0x3c   : > { %p1662_p10 = scmp.lt.s32.totalorder %s2030_s18, 2  ;;  %s2596_s0 = smov (%p55_p1, %s53_s0), 0 }
  0x3d   : > { %2568 = sst [smem:[#allocation26_spill]] %s2596_s0  ;;  %p198_p12 = por %p197_p6, %p196_p2 }
  0x3e   : > { %p2569_p7 = scmp.eq.s32.totalorder %s2151_s19, 1  ;;  %s186_s26 = ssub.s32 %s2026_s17, %s2596_s0 }
  0x3f   : > { %s514_s24 = sand.u32 1, %s2018_s15   ;;  %p187_p13 = scmp.eq.s32.totalorder %s186_s26, 0 }
  0x40   : > { %p2213_p9 = por %p2569_p7, %p196_p2  ;;  %s1484_s20 = sshll.u32 %s514_s24, 2 }
  0x41   : > { %s1485_s27 = sshll.u32 %s2026_s17, 6  ;;  %s2571_s5 = sld [smem:[#allocation30_spill]] }
  0x42   : > { %s2222_s28 = scalar_select %p187_p13, %s2018_s15, %s189_s29  }
  0x43   : > { %s518_s13 = scalar_lea.vmem [#allocation6], %s1484_s20  ;;  %p2229_p11 = pnand %p1662_p10, %p198_p12 }
  0x44   : > { %s525_s11 = sshll.u32 %s518_s13, 4  ;;  %s2573_s6 = sld [smem:[#allocation31_spill]]  ;;  %s526_s11 = int_to_ptr.vmem [resolvable:$true] %s525_s11 }
  0x45   : > { %s515_s29 = scalar_lea.sflag [#allocation3], %s514_s24  ;;  %p1798_p0 = pneg %p2229_p11 }
  0x46   : > { %s1809_s10 = scalar_lea.vmem %s526_s11, 64  ;;  %s2036_s13 = smov [#allocation6]  }
  0x47   : > { %s523_s14 = scalar_lea.hbm %s2571_s5, %s1485_s27  ;;  %p1810_p5 = scmp.ne.s32.totalorder %s526_s11, %s1809_s10 }
  0x48   : > { %s1814_s22 = sshll.u32 %s2036_s13, 4  ;;  %s1815_s22 = int_to_ptr.vmem [resolvable:$false] %s1814_s22 }
  0x49   : > { %p1812_p3 = pnand %p1810_p5, %p1798_p0  ;;  %s1816_s5 = scalar_lea.vmem %s1815_s22, 128 }
  0x4a   : > { %s2236_s17 = scalar_lea.hbm %s2573_s6, %s1485_s27  ;;  %p1817_p2 = scmp.lt.s32.totalorder %s526_s11, %s1815_s22 }
  0x4b   : > { %p1813_p1 = pneg %p1812_p3  ;;  %p1818_p6 = scmp.lt.s32.totalorder %s1816_s5, %s1809_s10 }
  0x4d   : > { %p1819_p10 = por %p1818_p6, %p1817_p2 }
  0x4f   : > { %p1820_p12 = pnand %p1819_p10, %p1813_p1 }
  0x51   : > { %1823 = shalt.err (!%p1820_p12)
}
  0x52   : > { %1643 = dma.hbm_to_vmem [thread:$0]  (!%p2229_p11), %s523_s14, 64, %s526_s11, %s515_s29  }
  0x53   : > { %s532_s0 = sand.u32 1, %s2030_s18   ;;  %s536_s24 = scalar_lea.vmem [#allocation7], %s1484_s20 }
  0x54   : > { %s543_s27 = sshll.u32 %s536_s24, 4  ;;  %s533_s26 = scalar_lea.sflag [#allocation8], %s532_s0  ;;  %s544_s27 = int_to_ptr.vmem [resolvable:$true] %s543_s27 }
  0x55   : > { %s1837_s6 = scalar_lea.vmem %s544_s27, 64  ;;  %s2037_s5 = smov [#allocation7]  }
  0x56   : > { %p1838_p7 = scmp.ne.s32.totalorder %s544_s27, %s1837_s6  ;;  %s1842_s10 = sshll.u32 %s2037_s5, 4  ;;  %s1843_s10 = int_to_ptr.vmem [resolvable:$false] %s1842_s10 }
  0x57   : > { %s1844_s13 = scalar_lea.vmem %s1843_s10, 128  ;;  %p1845_p3 = scmp.lt.s32.totalorder %s544_s27, %s1843_s10 }
  0x58   : > { %p1840_p13 = pnand %p1838_p7, %p1798_p0  ;;  %p1846_p1 = scmp.lt.s32.totalorder %s1844_s13, %s1837_s6 }
  0x5a   : > { %p1841_p5 = pneg %p1840_p13  ;;  %p1847_p2 = por %p1846_p1, %p1845_p3 }
  0x5c   : > { %p1848_p6 = pnand %p1847_p2, %p1841_p5 }
  0x5e   : > { %1851 = shalt.err (!%p1848_p6)
}
  0x5f   : > { %1646 = dma.hbm_to_vmem [thread:$0]  (!%p2229_p11), %s2236_s17, 64, %s544_s27, %s533_s26  }
  0x60   : > { %552 = sbr.rel (%p2172_p8) target bundleno = 807 (0x327), region = 64  ;;  %p2574_p10 = scmp.eq.s32.totalorder (!%p2172_p8), %s2151_s19, 0 }
  0x65   : > { %1981 = dma.done.wait (%p2574_p10), [#allocation5], 16   ;;  %p2575_p0 = pmov %p2574_p10 }
  0x66   : > { %s2259_s11 = sand.u32 1, %s2014_s30  }
  0x67   : > { %1983 = vsyncadd (%p2575_p0), [#allocation5], 4294967280  ;;  %s1490_s6 = sshll.u32 %s2259_s11, 2  ;;  %s559_s14 = scalar_lea.sflag [#allocation3], %s2259_s11 }
  0x68   : > { %s2263_s12 = scalar_lea.vmem [#allocation6], %s1490_s6 }
  0x69   : > { %1985 = dma.done.wait (%p2162_p4), %s559_s14, 64  }
  0x6a   : > { %1987 = vsyncadd (%p2162_p4), %s559_s14, 4294967232  ;;  %s2548_s17 = sand.u32 1, %s2151_s19   ;;  %s2272_s20 = scalar_lea.vmem [#allocation7], %s1490_s6 }
  0x6b   : > { %s568_s23 = scalar_lea.sflag [#allocation8], %s2548_s17 }
  0x6c   : > { %1989 = dma.done.wait (%p2162_p4), %s568_s23, 64  }
  0x6d   : > { %1991 = vsyncadd (%p2162_p4), %s568_s23, 4294967232  ;;  %p2576_p8 = pmov %p2575_p0 }
  0x6e   : > { %p2577_p11 = pmov %p2575_p0 }
  0x6f   : > { %1993 = dma.done.wait (%p2576_p8), [#allocation8], 1024  }
  0x70   : > { %1995 = vsyncadd (%p2577_p11), [#allocation8], 4294966272 }
  0x71   : > { %580 = sfence }
  0x72   : > { %v1723_v0 = vld [vmem:[%s2531_s8 + $0x38] sm:$0xff]   ;;  %v2038_v1 = vmov 0.0   ;;  %v1724_v2 = vld [vmem:[%s2531_s8 + $0x30] sm:$0xff]   ;;  %vm2039_vm0 = vmmov 0   ;;  %v2040_v3 = vmov 0   ;;  %p662_p4 = scmp.lt.s32.totalorder %s2022_s16, 1  ;;  %v702_v36 = vlaneseq }
  0x73   : > { %1555 = vmatprep.subr.bf16.mxu0 %v2038_v1  ;;  %1575 = vmatprep.subr.bf16.mxu1 %v2038_v1  ;;  %v1725_v4 = vld [vmem:[%s2531_s8 + $0x28] sm:$0xff]   ;;  %s684_s14 = sld [smem:[#allocation2]]  ;;  %v1726_v5 = vld [vmem:[%s2531_s8 + $0x20] sm:$0xff]   ;;  %v1727_v9 = vld [vmem:[%s2531_s8 + $0x18] sm:$0xff]   ;;  %vm897_vm3 = vcmask 1043456   ;;  %vm893_vm4 = vcmask 64512  }
  0x74   : > { %1556 = vmatpush3.bf16.msra.mxu0 %v1723_v0  ;;  %1571 = vmatprep.mubr.msk.bf16.mxu0 %vm2039_vm0, %v2038_v1  ;;  %s663_s24 = scalar_select %p662_p4, %s2022_s16, 1  ;;  %v1728_v15 = vld [vmem:[%s2531_s8 + $0x10] sm:$0xff]   ;;  %v1729_v16 = vld [vmem:[%s2531_s8 + $0x8] sm:$0xff]   ;;  %v1730_v17 = vld [vmem:[%s2531_s8] sm:$0xff]   ;;  %v2346_v38 = vshrl.u32 %v702_v36, 7  ;;  %v708_v52 = vand.u32 127, %v702_v36 }
  0x75   : > { %1557 = vmatprep.subr.bf16.mxu0 %v2038_v1  ;;  %1721 = vset.pattern.permute.xlu0 %v2040_v3  ;;  %s2578_s2 = sld [smem:[#allocation29_spill]]  ;;  %v692_v18 = vld [vmem:[%s2272_s20] sm:$0xf]  ;;  %v691_v20 = vld [vmem:[%s2263_s12] sm:$0xf]  ;;  %v1733_v0 = vld [vmem:[#allocation9 + $0x28] sm:$0xff]  }
  0x76   : > { %1577 = vmatprep.mubr.msk.bf16.mxu1 %vm2039_vm0, %v2038_v1  ;;  %1722 = vset.pattern.permute.xlu1 %v2040_v3  ;;  %s2301_s5 = sshll.u32 %s663_s24, 3  ;;  %s2579_s1 = sld [smem:[#allocation28_spill]]  ;;  %v1502_v22 = vld [vmem:[%s2532_s9] ss:$0 sm:$0xff]  ;;  %v718_v43 = vsub.s32 0, %v2346_v38  ;;  %vm709_vm2 = vcmp.le.s32.totalorder %v708_v52, %v2346_v38  ;;  %v986_v61 = vsel %vm897_vm3, %v692_v18, 0 }
  0x77   : > { %s682_s6 = scalar_lea.vmem %s2527_s4, %s2301_s5  ;;  %s678_s27 = scalar_lea.vmem %s2526_s3, %s2301_s5  ;;  %v1731_v62 = vld [vmem:[#allocation9 + $0x38] sm:$0xff]   ;;  %v1732_v63 = vld [vmem:[#allocation9 + $0x30] sm:$0xff]  }
  0x78   : > { %1558 = vmatpush3.bf16.msra.mxu0 %v1724_v2  ;;  %v690_v6 = vld [vmem:[%s682_s6] sm:$0xff]  ;;  %s1501_s26 = sld [smem:[#allocation2 + $0x2]]  ;;  %v1734_v2 = vld [vmem:[#allocation9 + $0x20] sm:$0xff]   ;;  %v1735_v3 = vld [vmem:[#allocation9 + $0x18] sm:$0xff]   ;;  %s2392_s29 = sshll.u32 %s2022_s16, 7 }
  0x79   : > { %1559 = vmatprep.subr.bf16.mxu0 %v2038_v1  ;;  %856 = vperm.xlu0 %1721, %v690_v6   ;;  %v693_v10 = vstv %s684_s14  ;;  %s697_s23 = ssub.f32 0.0, %s684_s14  ;;  %v689_v21 = vld [vmem:[%s678_s27] sm:$0xff]  ;;  %v1738_v6 = vld [vmem:[#allocation9] sm:$0xff]   ;;  %s2581_s10 = sand.u32 1, %s2151_s19  }
  0x7a   : > { %883 = vperm.xlu1 %1722, %v689_v21   ;;  %s1500_s12 = sld [smem:[#allocation2 + $0x1]]  ;;  %s2400_s13 = scalar_lea.sflag [#allocation12], %s2581_s10 }
  0x7b   : > { %s671_s0 = scalar_lea.vmem %s2578_s2, %s663_s24  ;;  %v698_v12 = vstv %s697_s23  ;;  %s2377_s23 = sshll.u32 %s2259_s11, 3 }
  0x7c   : > { %s668_s17 = scalar_lea.vmem %s2579_s1, %s2301_s5  ;;  %1560 = vmatpush3.bf16.msra.mxu0 %v1725_v4  ;;  %v688_v8 = vld [vmem:[%s671_s0] sm:$0x1]  ;;  %s647_s24 = scalar_lea.vmem [#allocation11], %s2377_s23 }
  0x7d   : > { %v687_v7 = vld [vmem:[%s668_s17] sm:$0xff]  ;;  %1561 = vmatprep.subr.bf16.mxu0 %v2038_v1  ;;  %v699_v13 = vmul.f32 %v698_v12, %v688_v8  ;;  %s654_s17 = scalar_lea.vmem [#allocation13], %s2377_s23  ;;  %s640_s6 = scalar_lea.vmem [#allocation10], %s2377_s23 }
  0x7e   : > { %v694_v11 = vmul.f32 %v693_v10, %v687_v7  ;;  %v835_v24 = vstv %s1501_s26  ;;  %v1736_v4 = vld [vmem:[#allocation9 + $0x10] sm:$0xff]   ;;  %s1194_s14 = sshll.u32 %s654_s17, 4  ;;  %s1180_s22 = sshll.u32 %s647_s24, 4  ;;  %s2389_s14 = int_to_ptr.vmem [resolvable:$true] %s1194_s14  ;;  %s1181_s22 = int_to_ptr.vmem [resolvable:$true] %s1180_s22 }
  0x7f   : > { %v700_v33 = vmul.f32 1.442695, %v699_v13  ;;  %v861_v7 = vld [vmem:[%s2530_s7] sm:$0x1]  ;;  %s2580_s27 = sld [smem:[#allocation34_spill]]  ;;  %s2041_s20 = smov [#allocation11]  }
  0x80   : > { %1562 = vmatpush3.bf16.msra.mxu0 %v1726_v5  ;;  %v695_v14 = vmul.f32 1.442695, %v694_v11  ;;  %v1737_v5 = vld [vmem:[#allocation9 + $0x8] sm:$0xff]   ;;  %v862_v8 = vstv %s1500_s12  ;;  %s1852_s12 = scalar_lea.vmem %s1181_s22, 128  ;;  %s1856_s5 = sshll.u32 %s2041_s20, 4  ;;  %s1857_s5 = int_to_ptr.vmem [resolvable:$false] %s1856_s5 }
  0x81   : > { %1563 = vmatprep.subr.bf16.mxu0 %v2038_v1  ;;  %p1853_p12 = scmp.ne.s32.totalorder %s1181_s22, %s1852_s12  ;;  %s1858_s16 = scalar_lea.vmem %s1857_s5, 256 }
  0x82   : > { %1739 = vpow2.f32 %v695_v14  ;;  %p1859_p5 = scmp.lt.s32.totalorder %s1181_s22, %s1857_s5  ;;  %p1860_p3 = scmp.lt.s32.totalorder %s1858_s16, %s1852_s12 }
  0x83   : > { %p1854_p7 = pnand %p1853_p12, %p2213_p9 }
  0x84   : > { %1564 = vmatpush3.bf16.msra.mxu0 %v1727_v9  ;;  %v863_v9 = vmul.f32 %v862_v8, %v861_v7  ;;  %p1861_p1 = por %p1860_p3, %p1859_p5 }
  0x85   : > { %1565 = vmatprep.subr.bf16.mxu0 %v2038_v1  ;;  %s1178_s26 = scalar_lea.hbm %s2580_s27, %s2392_s29  ;;  %p1855_p13 = pneg %p1854_p7 }
  0x86   : > { %v865_v10 = vand.u32 2147483647, %v863_v9 }
  0x87   : > { %p1862_p2 = pnand %p1861_p1, %p1855_p13 }
  0x88   : > { %1566 = vmatpush3.bf16.msra.mxu0 %v1728_v15  ;;  %v866_v11 = vsub.f32 0.0, %v865_v10 }
  0x89   : > { %1567 = vmatprep.subr.bf16.mxu0 %v2038_v1 }
  0x8a   : > { %v867_v12 = vmul.f32 1.442695, %v866_v11 }
  0x8c   : > { %1568 = vmatpush3.bf16.msra.mxu0 %v1729_v16 }
  0x8d   : > { %1569 = vmatprep.subr.bf16.mxu0 %v2038_v1 }
  0x8f   : > { %v1740_v19 = vpop.eup %1739 }
  0x90   : > { %1570 = vmatpush3.bf16.msra.mxu0 %v1730_v17  ;;  %712 = vperm.xlu0 %1721, %v1740_v19  }
  0x91   : > { %1581 = vmatprep.subr.bf16.mxu0 %v2038_v1 }
  0x93   : > { %1572 = vmatmul.mubr.bf16.vlgmr.msra.gmra.mxu0 %v692_v18 }
  0x94   : > { %1583 = vmatprep.mubr.msk.bf16.mxu0 %vm2039_vm0, %v2038_v1  ;;  %1582 = vmatpush3.bf16.xpose.msra.mxu0 %v691_v20  ;;  %v864_v20 = vmax.f32 %v863_v9, 0.0 }
  0xf4   : > { %v857_v41 = vpop.permute.xlu0 %856 }
 0x10b   : > { %v713_v53 = vpop.permute.xlu0 %712 }
 0x153   : > { %v829_v23 = vpop.f32.mrf.mxu0 }
 0x154   : > { %v830_v25 = vadd.f32 %v1502_v22, %v829_v23 }
 0x155   : > { %v1573_v26 = vpop.f32.mrf.mxu0 }
 0x156   : > { %v836_v27 = vmul.f32 %v835_v24, %v830_v25  ;;  %v2379_v26 = vpop.permute.xlu1 %883 }
 0x157   : > { %v832_v28 = vpop.f32.mrf.mxu0 }
 0x158   : > { %v838_v29 = vand.u32 2147483647, %v836_v27  ;;  %v837_v47 = vmax.f32 %v836_v27, 0.0 }
 0x159   : > { %v1574_v30 = vpop.f32.mrf.mxu0 }
 0x15a   : > { %v839_v31 = vsub.f32 0.0, %v838_v29 }
 0x15c   : > { %v840_v32 = vmul.f32 1.442695, %v839_v31 }
 0x15e   : > { %1741 = vpow2.f32 %v840_v32 }
 0x15f   : > { %1743 = vpow2.f32 %v700_v33 }
 0x16b   : > { %v1742_v34 = vpop.eup %1741 }
 0x16c   : > { %v842_v35 = vadd.f32 1.0, %v1742_v34  ;;  %v845_v37 = vmul.f32 -0.5, %v1742_v34  ;;  %v848_v40 = vand.u32 2147483647, %v1742_v34  ;;  %v1744_v42 = vpop.eup %1743 }
 0x16d   : > { %v719_v50 = vrot.slane %v1744_v42, %v718_v43 }
 0x16e   : > { %1745 = vlog2.f32 %v842_v35  ;;  %v846_v39 = vadd.f32 1.0, %v845_v37  ;;  %vm849_vm1 = vcmp.lt.f32.partialorder %v848_v40, 0.0004427343 }
 0x16f   : > { %1747 = vrcp.f32 %v835_v24  ;;  %v721_v55 = vmul.f32 %v719_v50, %v713_v53 }
 0x170   : > { %v847_v46 = vmul.f32 %v1742_v34, %v846_v39  ;;  %1749 = vpow2.f32 %v867_v12 }
 0x171   : > { %v2352_v58 = vsel %vm709_vm2, %v721_v55, 0.0 }
 0x172   : > { %v723_v60 = vpack.c.bf16 %v2352_v58, %v2352_v58 }
 0x17b   : > { %v1746_v44 = vpop.eup %1745 }
 0x17c   : > { %v844_v45 = vmul.f32 0.6931472, %v1746_v44  ;;  %v1748_v48 = vpop.eup %1747 }
 0x17d   : > { %v1750_v13 = vpop.eup %1749 }
 0x17e   : > { %v850_v49 = vsel %vm849_vm1, %v847_v46, %v844_v45  ;;  %v869_v14 = vadd.f32 1.0, %v1750_v13  ;;  %v872_v15 = vmul.f32 -0.5, %v1750_v13  ;;  %v875_v17 = vand.u32 2147483647, %v1750_v13 }
 0x17f   : > { %v851_v51 = vadd.f32 %v850_v49, %v837_v47 }
 0x180   : > { %1751 = vlog2.f32 %v869_v14  ;;  %vm876_vm5 = vcmp.lt.f32.partialorder %v875_v17, 0.0004427343 }
 0x181   : > { %v853_v54 = vmul.f32 %v1748_v48, %v851_v51  ;;  %1753 = vrcp.f32 %v862_v8 }
 0x183   : > { %v859_v56 = vmul.f32 %v857_v41, %v853_v54 }
 0x185   : > { %v860_v57 = vpack.c.bf16 %v859_v56, %v859_v56 }
 0x187   : > { %1584 = vmatmul.mubr.bf16.vlgmr.msra.gmra.mxu0 %v860_v57  ;;  %v899_v59 = vsel %vm897_vm3, %v860_v57, 0 }
 0x188   : > { %1576 = vmatpush3.bf16.msra.mxu1 %v899_v59 }
 0x189   : > { %1587 = vmatprep.subr.bf16.mxu1 %v2038_v1 }
 0x18b   : > { %1578 = vmatmul.mubr.msk.bf16.vlgmr.msra.gmra.mxu1 %vm893_vm4, %v723_v60 }
 0x18c   : > { %1588 = vmatpush3.bf16.msra.mxu1 %v986_v61  ;;  %1589 = vmatprep.mubr.msk.bf16.mxu1 %vm2039_vm0, %v2038_v1 }
 0x18d   : > { %1593 = vmatprep.subr.bf16.mxu1 %v2038_v1  ;;  %v1752_v16 = vpop.eup %1751 }
 0x18e   : > { %v871_v18 = vmul.f32 0.6931472, %v1752_v16  ;;  %v1754_v23 = vpop.eup %1753 }
 0x193   : > { %1590 = vmatmul.mubr.msk.bf16.vlgmr.msra.gmra.mxu1 %vm893_vm4, %v723_v60 }
 0x194   : > { %1594 = vmatpush3.bf16.msra.mxu1 %v1731_v62  ;;  %1609 = vmatprep.mubr.msk.bf16.mxu1 %vm2039_vm0, %v2038_v1 }
 0x195   : > { %1595 = vmatprep.subr.bf16.mxu1 %v2038_v1 }
 0x198   : > { %1596 = vmatpush3.bf16.msra.mxu1 %v1732_v63 }
 0x199   : > { %1597 = vmatprep.subr.bf16.mxu1 %v2038_v1 }
 0x19c   : > { %1598 = vmatpush3.bf16.msra.mxu1 %v1733_v0 }
 0x19d   : > { %1599 = vmatprep.subr.bf16.mxu1 %v2038_v1 }
 0x1a0   : > { %1600 = vmatpush3.bf16.msra.mxu1 %v1734_v2 }
 0x1a1   : > { %1601 = vmatprep.subr.bf16.mxu1 %v2038_v1 }
 0x1a4   : > { %1602 = vmatpush3.bf16.msra.mxu1 %v1735_v3 }
 0x1a5   : > { %1603 = vmatprep.subr.bf16.mxu1 %v2038_v1 }
 0x1a8   : > { %1604 = vmatpush3.bf16.msra.mxu1 %v1736_v4 }
 0x1a9   : > { %1605 = vmatprep.subr.bf16.mxu1 %v2038_v1 }
 0x1ac   : > { %1606 = vmatpush3.bf16.msra.mxu1 %v1737_v5 }
 0x1ad   : > { %1607 = vmatprep.subr.bf16.mxu1 %v2038_v1  ;;  %v873_v1 = vadd.f32 1.0, %v872_v15 }
 0x1af   : > { %v874_v19 = vmul.f32 %v1750_v13, %v873_v1 }
 0x1b0   : > { %1608 = vmatpush3.bf16.msra.mxu1 %v1738_v6 }
 0x1b1   : > { %v877_v21 = vsel %vm876_vm5, %v874_v19, %v871_v18 }
 0x1b2   : > { %v878_v22 = vadd.f32 %v877_v21, %v864_v20 }
 0x1b4   : > { %v880_v24 = vmul.f32 %v1754_v23, %v878_v22 }
 0x1b6   : > { %v890_v25 = vrot.slane %v880_v24, %v718_v43 }
 0x1b8   : > { %v892_v29 = vmul.f32 %v890_v25, %v2379_v26 }
 0x247   : > { %v977_v27 = vpop.f32.mrf.mxu0 }
 0x248   : > { %v983_v28 = vmul.f32 %v977_v27, %v2352_v58 }
 0x249   : > { %v1585_v30 = vpop.f32.mrf.mxu0 }
 0x24a   : > { %984 = vst.msk [vmem:[%s647_s24] sm:$0xff] %vm893_vm4, %v983_v28 }
 0x24b   : > { %v935_v31 = vpop.f32.mrf.mxu1  ;;  %v980_v32 = vpop.f32.mrf.mxu0 }
 0x24c   : > { %v941_v33 = vadd.f32 %v935_v31, %v892_v29 }
 0x24d   : > { %v1579_v34 = vpop.f32.mrf.mxu1  ;;  %v1586_v35 = vpop.f32.mrf.mxu0 }
 0x24e   : > { %942 = vst [vmem:[%s654_s17] sm:$0xff] %v941_v33 }
 0x24f   : > { %v938_v36 = vpop.f32.mrf.mxu1 }
 0x251   : > { %v1580_v37 = vpop.f32.mrf.mxu1 }
 0x253   : > { %v1022_v38 = vpop.f32.mrf.mxu1 }
 0x254   : > { %1028 = vst [vmem:[%s640_s6] sm:$0xff] %v1022_v38  ;;  %v1029_v39 = vpack.c.bf16 %v1022_v38, %v1022_v38 }
 0x255   : > { %v1591_v40 = vpop.f32.mrf.mxu1 }
 0x256   : > { %1610 = vmatmul.mubr.bf16.vlgmr.msra.gmra.mxu1 %v1029_v39 }
 0x257   : > { %v1025_v41 = vpop.f32.mrf.mxu1 }
 0x259   : > { %v1592_v42 = vpop.f32.mrf.mxu1 }
 0x25a   : > { %1865 = shalt.err (!%p1862_p2)
}
 0x25b   : > { %s1866_s24 = scalar_lea.hbm %s1178_s26, 128  ;;  %s1870_s21 = scalar_lea.hbm %s2580_s27, 256 }
 0x25c   : > { %p1867_p6 = scmp.ne.s32.totalorder %s1178_s26, %s1866_s24  ;;  %p1871_p8 = scmp.lt.s32.totalorder %s1178_s26, %s2580_s27 }
 0x25d   : > { %p1872_p11 = scmp.lt.s32.totalorder %s1870_s21, %s1866_s24 }
 0x25e   : > { %p1868_p10 = pnand %p1867_p6, %p2213_p9 }
 0x25f   : > { %p1873_p4 = por %p1872_p11, %p1871_p8 }
 0x260   : > { %p1869_p0 = pneg %p1868_p10 }
 0x262   : > { %p1874_p12 = pnand %p1873_p4, %p1869_p0 }
 0x264   : > { %1877 = shalt.err (!%p1874_p12)
}
 0x265   : > { %1626 = dma.vmem_to_hbm [thread:$0]  (%p2213_p9), %s1181_s22, 128, %s1178_s26, %s2400_s13  }
 0x266   : > { %s2582_s5 = sld [smem:[#allocation33_spill]]  ;;  %s1166_s19 = sshll.u32 %s640_s6, 4  ;;  %s1167_s19 = int_to_ptr.vmem [resolvable:$true] %s1166_s19 }
 0x267   : > { %s2583_s21 = sld [smem:[#allocation35_spill]]  ;;  %s1137_s10 = scalar_lea.sflag [#allocation4], %s2259_s11 }
 0x268   : > { %s1878_s1 = scalar_lea.vmem %s1167_s19, 128  ;;  %s2042_s22 = smov [#allocation10]  }
 0x269   : > { %p1879_p7 = scmp.ne.s32.totalorder %s1167_s19, %s1878_s1  ;;  %s1882_s26 = sshll.u32 %s2042_s22, 4  ;;  %s1883_s26 = int_to_ptr.vmem [resolvable:$false] %s1882_s26 }
 0x26a   : > { %s1884_s12 = scalar_lea.vmem %s1883_s26, 256  ;;  %p1885_p3 = scmp.lt.s32.totalorder %s1167_s19, %s1883_s26 }
 0x26b   : > { %p1880_p13 = pnand %p1879_p7, %p2213_p9  ;;  %p1886_p1 = scmp.lt.s32.totalorder %s1884_s12, %s1878_s1 }
 0x26c   : > { %s2419_s16 = scalar_lea.hbm %s2582_s5, %s2392_s29 }
 0x26d   : > { %s2427_s0 = scalar_lea.hbm %s2583_s21, %s2392_s29  ;;  %p1881_p5 = pneg %p1880_p13 }
 0x26e   : > { %p1887_p2 = por %p1886_p1, %p1885_p3 }
 0x270   : > { %p1888_p6 = pnand %p1887_p2, %p1881_p5 }
 0x272   : > { %1891 = shalt.err (!%p1888_p6)
}
 0x273   : > { %s1892_s6 = scalar_lea.hbm %s2419_s16, 128  ;;  %s1896_s17 = scalar_lea.hbm %s2582_s5, 256 }
 0x274   : > { %p1893_p10 = scmp.ne.s32.totalorder %s2419_s16, %s1892_s6  ;;  %p1897_p11 = scmp.lt.s32.totalorder %s2419_s16, %s2582_s5 }
 0x275   : > { %p1898_p4 = scmp.lt.s32.totalorder %s1896_s17, %s1892_s6 }
 0x276   : > { %p1894_p0 = pnand %p1893_p10, %p2213_p9 }
 0x277   : > { %p1899_p12 = por %p1898_p4, %p1897_p11 }
 0x278   : > { %p1895_p8 = pneg %p1894_p0 }
 0x27a   : > { %p1900_p7 = pnand %p1899_p12, %p1895_p8 }
 0x27c   : > { %1903 = shalt.err (!%p1900_p7)
}
 0x27d   : > { %1625 = dma.vmem_to_hbm [thread:$0]  (%p2213_p9), %s1167_s19, 128, %s2419_s16, %s1137_s10  }
 0x27e   : > { %s1904_s1 = scalar_lea.vmem %s2389_s14, 128  ;;  %s2043_s26 = smov [#allocation13]  }
 0x27f   : > { %p1905_p13 = scmp.ne.s32.totalorder %s2389_s14, %s1904_s1  ;;  %s1908_s2 = sshll.u32 %s2043_s26, 4  ;;  %s1909_s2 = int_to_ptr.vmem [resolvable:$false] %s1908_s2 }
 0x280   : > { %s1910_s12 = scalar_lea.vmem %s1909_s2, 256  ;;  %p1911_p1 = scmp.lt.s32.totalorder %s2389_s14, %s1909_s2 }
 0x281   : > { %p1906_p5 = pnand %p1905_p13, %p2213_p9  ;;  %p1912_p2 = scmp.lt.s32.totalorder %s1910_s12, %s1904_s1 }
 0x283   : > { %p1907_p3 = pneg %p1906_p5  ;;  %p1913_p6 = por %p1912_p2, %p1911_p1 }
 0x285   : > { %p1914_p10 = pnand %p1913_p6, %p1907_p3 }
 0x287   : > { %1917 = shalt.err (!%p1914_p10)
}
 0x288   : > { %s1918_s6 = scalar_lea.hbm %s2427_s0, 128  ;;  %s1922_s10 = scalar_lea.hbm %s2583_s21, 256 }
 0x289   : > { %p1919_p0 = scmp.ne.s32.totalorder %s2427_s0, %s1918_s6  ;;  %p1923_p4 = scmp.lt.s32.totalorder %s2427_s0, %s2583_s21 }
 0x28a   : > { %p1924_p12 = scmp.lt.s32.totalorder %s1922_s10, %s1918_s6 }
 0x28b   : > { %p1920_p8 = pnand %p1919_p0, %p2213_p9 }
 0x28c   : > { %p1925_p7 = por %p1924_p12, %p1923_p4 }
 0x28d   : > { %p1921_p11 = pneg %p1920_p8 }
 0x28f   : > { %p1926_p13 = pnand %p1925_p7, %p1921_p11 }
 0x291   : > { %1929 = shalt.err (!%p1926_p13)
}
 0x292   : > { %1627 = dma.vmem_to_hbm [thread:$0]  (%p2213_p9), %s2389_s14, 128, %s2427_s0, %s2400_s13  }
 0x293   : > { %s661_s17 = scalar_lea.vmem [#allocation14], %s2377_s23  ;;  %s2584_s2 = sld [smem:[#allocation36_spill]] }
 0x294   : > { %s1208_s22 = sshll.u32 %s661_s17, 4  ;;  %s1152_s6 = scalar_lea.sflag [#allocation15], %s2259_s11  ;;  %s2475_s22 = int_to_ptr.vmem [resolvable:$true] %s1208_s22 }
 0x295   : > { %s1930_s14 = scalar_lea.vmem %s2475_s22, 128  ;;  %s2044_s23 = smov [#allocation14]  }
 0x296   : > { %p1931_p5 = scmp.ne.s32.totalorder %s2475_s22, %s1930_s14  ;;  %s1934_s13 = sshll.u32 %s2044_s23, 4  ;;  %s1935_s13 = int_to_ptr.vmem [resolvable:$false] %s1934_s13 }
 0x297   : > { %s1936_s0 = scalar_lea.vmem %s1935_s13, 256  ;;  %p1937_p2 = scmp.lt.s32.totalorder %s2475_s22, %s1935_s13 }
 0x298   : > { %p1932_p3 = pnand %p1931_p5, %p2213_p9  ;;  %p1938_p6 = scmp.lt.s32.totalorder %s1936_s0, %s1930_s14 }
 0x299   : > { %s2473_s12 = scalar_lea.hbm %s2584_s2, %s2392_s29 }
 0x29a   : > { %p1933_p1 = pneg %p1932_p3  ;;  %p1939_p10 = por %p1938_p6, %p1937_p2 }
 0x29c   : > { %p1940_p0 = pnand %p1939_p10, %p1933_p1 }
 0x316   : > { %v1128_v43 = vpop.f32.mrf.mxu1 }
 0x317   : > { %v1134_v44 = vmul.f32 %v1128_v43, %v2379_v26 }
 0x318   : > { %v1611_v45 = vpop.f32.mrf.mxu1 }
 0x319   : > { %1135 = vst [vmem:[%s661_s17] sm:$0xff] %v1134_v44 }
 0x31a   : > { %v1131_v46 = vpop.f32.mrf.mxu1 }
 0x31b   : > { %1943 = shalt.err (!%p1940_p0)
}
 0x31c   : > { %s1944_s29 = scalar_lea.hbm %s2473_s12, 128  ;;  %s1948_s19 = scalar_lea.hbm %s2584_s2, 256 }
 0x31d   : > { %p1945_p8 = scmp.ne.s32.totalorder %s2473_s12, %s1944_s29  ;;  %p1949_p12 = scmp.lt.s32.totalorder %s2473_s12, %s2584_s2 }
 0x31e   : > { %p1950_p7 = scmp.lt.s32.totalorder %s1948_s19, %s1944_s29 }
 0x31f   : > { %p1946_p11 = pnand %p1945_p8, %p2213_p9 }
 0x320   : > { %p1951_p13 = por %p1950_p7, %p1949_p12 }
 0x321   : > { %p1947_p4 = pneg %p1946_p11 }
 0x323   : > { %p1952_p5 = pnand %p1951_p13, %p1947_p4 }
 0x325   : > { %1955 = shalt.err (!%p1952_p5)
}
 0x326   : > { %1628 = dma.vmem_to_hbm [thread:$0]  (%p2213_p9), %s2475_s22, 128, %s2473_s12, %s1152_s6   ;;  %v1612_v47 = vpop.f32.mrf.mxu1 }
 0x327 PF: > { %s2585_s24 = sld [smem:[#allocation23_spill]]  ;;  %p2588_p1 = scmp.ge.s32.totalorder %s2030_s18, 2 }
 0x328   : > { %s2586_s17 = sld [smem:[#allocation25_spill]] }
 0x32d   : > { %s1220_s1 = sand.u32 1, %s2585_s24  }
 0x32e   : > { %p2587_p3 = scmp.ne.s32.totalorder %s2586_s17, 0  ;;  %s1221_s26 = scalar_lea.sflag [#allocation4], %s1220_s1 }
 0x330   : > { %p1648_p2 = pnand %p2588_p1, %p2587_p3 }
 0x332   : > { %p1649_p6 = pneg %p1648_p2 }
 0x334   : > { %1997 = dma.done.wait (%p1649_p6), %s1221_s26, 128  }
 0x335   : > { %1999 = vsyncadd (%p1649_p6), %s1221_s26, 4294967168  ;;  %s2589_s14 = sadd.s32 4294967294, %s2030_s18  }
 0x336   : > { %s1229_s23 = sand.u32 1, %s2589_s14  }
 0x337   : > { %s1230_s25 = scalar_lea.sflag [#allocation12], %s1229_s23 }
 0x338   : > { %2001 = dma.done.wait (%p1649_p6), %s1230_s25, 256  }
 0x339   : > { %2003 = vsyncadd (%p1649_p6), %s1230_s25, 4294967040  ;;  %s1248_s22 = scalar_lea.sflag [#allocation15], %s1220_s1 }
 0x33a   : > { %2005 = dma.done.wait (%p1649_p6), %s1248_s22, 128  }
 0x33b   : > { %2007 = vsyncadd (%p1649_p6), %s1248_s22, 4294967168  ;;  %s41_s18 = sadd.s32 1, %s2030_s18   ;;  %s2590_s16 = sld [smem:[#allocation24_spill]] }
 0x33c   : > { %p38_p9 = scmp.ge.s32.totalorder %s41_s18, 4   ;;  %s2591_s17 = sld [smem:[#allocation26_spill]] }
 0x33d   : > { %s2592_s29 = smov %s2014_s30  ;;  %s2593_s30 = smov %s2018_s15 }
 0x33e   : > { %s2594_s15 = smov %s2222_s28  ;;  %40 = sbr.rel (!%p38_p9) target bundleno = 24 (0x18), region = 192 }
 0x343   :  { %1253 = vsyncpa [#allocation3], 1 }
 0x344   :  { %1255 = vsyncpa [#allocation3 + $0x1], 1 }
 0x345   :  { %1256 = vsyncpa [#allocation8], 1 }
 0x346   :  { %1258 = vsyncpa [#allocation8 + $0x1], 1 }
 0x347   :  { %1259 = vsyncpa [#allocation4], 1 }
 0x348   :  { %1261 = vsyncpa [#allocation4 + $0x1], 1 }
 0x349   :  { %1262 = vsyncpa [#allocation12], 1 }
 0x34a   :  { %1264 = vsyncpa [#allocation12 + $0x1], 1 }
 0x34b   :  { %1265 = vsyncpa [#allocation15], 1 }
 0x34c   :  { %1267 = vsyncpa [#allocation15 + $0x1], 1 }
 0x34d   :  { %1268 = vsyncpa [#allocation5], 1 }
 0x34e   :  { %1270 = vsyncpa [#allocation5 + $0x1], 1 }

</bundles_post_ra>
